<compile_context>
chip_gen: v5e
topology: v5e:2x2
jax: 0.10.0
libtpu: 0.0.40
codegen_flags: <defaults>
</compile_context>

<pallas_src>
import functools

import jax
import jax.numpy as jnp
from jax.experimental import pallas as pl
from jax.experimental.pallas import tpu as pltpu


# --------------------------------------------------------------------------- kernels
def _ffn_resident_kernel(x_ref, w1_ref, b1_ref, w2_ref, b2_ref, o_ref):
    """One row tile, full pf resident in VMEM: no scratch, no pl.when."""
    h = jnp.dot(x_ref[...], w1_ref[...], preferred_element_type=jnp.float32)
    h = jnp.maximum(h + b1_ref[...].astype(jnp.float32), 0.0)  # bias + ReLU on f32
    # dropout = identity (eval mode)
    y = jnp.dot(h.astype(x_ref.dtype), w2_ref[...], preferred_element_type=jnp.float32)
    o_ref[...] = (y + b2_ref[...].astype(jnp.float32)).astype(o_ref.dtype)


def _ffn_tiled_kernel(x_ref, w1_ref, b1_ref, w2_ref, b2_ref, o_ref, acc_ref):
    """pf-tiled reduction: partial fc2 output accumulated in a f32 VMEM scratch."""
    p = pl.program_id(1)

    @pl.when(p == 0)
    def _init():
        acc_ref[...] = jnp.zeros_like(acc_ref)

    h = jnp.dot(x_ref[...], w1_ref[...], preferred_element_type=jnp.float32)
    h = jnp.maximum(h + b1_ref[...].astype(jnp.float32), 0.0)  # exact: ReLU is per pf column
    # dropout = identity (eval mode)
    acc_ref[...] += jnp.dot(h.astype(x_ref.dtype), w2_ref[...],
                            preferred_element_type=jnp.float32)

    @pl.when(p == pl.num_programs(1) - 1)
    def _finalize():
        o_ref[...] = (acc_ref[...] + b2_ref[...].astype(jnp.float32)).astype(o_ref.dtype)


# --------------------------------------------------------------------------- helpers
def _round_up(x, m):
    return ((x + m - 1) // m) * m


def _sublane_min(dtype):
    itemsize = jnp.dtype(dtype).itemsize
    return {4: 8, 2: 16, 1: 32}.get(itemsize, 8)


def _vmem_budget_bytes():
    """~85% of per-core VMEM; leaves headroom for Mosaic internal scratch/semaphores."""
    cap = 64 * 1024 * 1024  # conservative fallback, valid as a limit on every generation
    try:
        info = pltpu.get_tpu_info()
        cap = int(getattr(info, "vmem_capacity_bytes", cap) or cap)
    except Exception:
        pass
    return int(cap * 0.85)


# --------------------------------------------------------------------------- wrapper
@functools.partial(jax.jit,
                   static_argnames=("block_m", "block_p", "single_buffer_consts",
                                    "force_tiled"))
def positionwise_ffn(x, w1, b1, w2, b2, *, block_m=512, block_p=2048,
                     single_buffer_consts=True, force_tiled=False):
    """x: [..., hidden].  w1: [hidden, pf], b1: [pf], w2: [pf, hidden], b2: [hidden]."""
    orig_shape = x.shape
    hidden = orig_shape[-1]
    pf = w1.shape[1]
    x2d = x.reshape(-1, hidden)
    m = x2d.shape[0]

    x_item = jnp.dtype(x.dtype).itemsize
    w_item = jnp.dtype(w1.dtype).itemsize
    sub = _sublane_min(x.dtype)

    vmem_limit = _vmem_budget_bytes()
    budget = max(vmem_limit - 4 * 1024 * 1024, 8 * 1024 * 1024)  # footprint margin

    def _const_spec(shape, index_map):
        # Constant-index block: single-buffer it when supported (frees VMEM, and the
        # block is only DMA'd once anyway since its index never changes).
        if single_buffer_consts:
            return pl.BlockSpec(shape, index_map, pipeline_mode=pl.Buffered(1))
        return pl.BlockSpec(shape, index_map)

    # ---- row tile -------------------------------------------------------------
    # Cap at block_m, never larger than the (sublane-rounded) row count; split into
    # >=2 row tiles when possible so the row axis can shard across v7x's two cores.
    tm = min(max(block_m, sub), max(_round_up(m, sub), sub))
    if m > sub and _round_up(m, tm) // tm < 2:
        tm = min(tm, _round_up((m + 1) // 2, sub))
    tm = _round_up(tm, sub)

    wb_factor = 1 if single_buffer_consts else 2

    def resident_footprint(tm_):
        wbytes = wb_factor * (2 * hidden * pf + pf + hidden) * w_item
        io = 2 * 2 * tm_ * hidden * x_item                   # x tile + out tile (double buffered)
        inter = tm_ * pf * (4 + x_item) + tm_ * hidden * 4   # f32 intermediate + f32 out temp
        return wbytes + io + inter

    resident = (not force_tiled) and resident_footprint(tm) <= budget
    tp = pf

    if not resident:
        # ---- pf-tiled fallback --------------------------------------------------
        if pf % 128 != 0:
            pf_pad = _round_up(pf, 128)
            w1 = jnp.pad(w1, ((0, 0), (0, pf_pad - pf)))
            b1 = jnp.pad(b1, (0, pf_pad - pf))
            w2 = jnp.pad(w2, ((0, pf_pad - pf), (0, 0)))
            pf = pf_pad

        def tiled_footprint(tm_, tp_):
            w = 2 * (2 * hidden * tp_ + tp_) * w_item + wb_factor * hidden * w_item
            io = 2 * 2 * tm_ * hidden * x_item
            acc = tm_ * hidden * 4
            inter = tm_ * tp_ * (4 + x_item)
            return w + io + acc + inter

        bp = max(128, (min(block_p, pf) // 128) * 128)
        tps = [t for t in range(128, bp + 1, 128) if pf % t == 0]
        tp = tps[0]
        for t in reversed(tps):           # largest 128-multiple divisor that fits
            if tiled_footprint(tm, t) <= budget:
                tp = t
                break
        while tiled_footprint(tm, tp) > budget and tm > sub:
            tm = max(sub, _round_up(tm // 2, sub))
        if (pf // tp) == 1 and not force_tiled:
            resident = True               # single pf step -> drop scratch / pl.when

    # ---- pad rows to a multiple of tm -------------------------------------------
    m_pad = _round_up(max(m, tm), tm)
    if m_pad != m:
        x2d = jnp.pad(x2d, ((0, m_pad - m), (0, 0)))
    grid_m = m_pad // tm

    b1_2d = b1.reshape(1, pf)
    b2_2d = b2.reshape(1, hidden)

    # HBM traffic: x read + out write once; weights once (resident / constant index)
    # or once per row tile (pf-tiled re-streaming).
    weight_bytes = (2 * hidden * pf + pf + hidden) * w_item
    weight_passes = 1 if resident else grid_m
    cost = pl.CostEstimate(
        flops=4 * m_pad * hidden * pf,
        transcendentals=0,
        bytes_accessed=2 * m_pad * hidden * x_item + weight_passes * weight_bytes,
    )

    if resident:
        out = pl.pallas_call(
            _ffn_resident_kernel,
            out_shape=jax.ShapeDtypeStruct((m_pad, hidden), x.dtype),
            grid=(grid_m,),
            in_specs=[
                pl.BlockSpec((tm, hidden), lambda i: (i, 0)),        # x row tile
                _const_spec((hidden, pf), lambda i: (0, 0)),         # W1 (resident)
                _const_spec((1, pf), lambda i: (0, 0)),              # b1 (resident)
                _const_spec((pf, hidden), lambda i: (0, 0)),         # W2 (resident)
                _const_spec((1, hidden), lambda i: (0, 0)),          # b2 (resident)
            ],
            out_specs=pl.BlockSpec((tm, hidden), lambda i: (i, 0)),
            compiler_params=pltpu.CompilerParams(
                dimension_semantics=("parallel",),
                vmem_limit_bytes=vmem_limit,
            ),
            cost_estimate=cost,
        )(x2d, w1, b1_2d, w2, b2_2d)
    else:
        out = pl.pallas_call(
            _ffn_tiled_kernel,
            out_shape=jax.ShapeDtypeStruct((m_pad, hidden), x.dtype),
            grid=(grid_m, pf // tp),
            in_specs=[
                pl.BlockSpec((tm, hidden), lambda i, p: (i, 0)),     # x row tile
                pl.BlockSpec((hidden, tp), lambda i, p: (0, p)),     # W1 pf slice
                pl.BlockSpec((1, tp), lambda i, p: (0, p)),          # b1 pf slice
                pl.BlockSpec((tp, hidden), lambda i, p: (p, 0)),     # W2 pf slice
                _const_spec((1, hidden), lambda i, p: (0, 0)),       # b2 (constant)
            ],
            out_specs=pl.BlockSpec((tm, hidden), lambda i, p: (i, 0)),
            scratch_shapes=[pltpu.VMEM((tm, hidden), jnp.float32)],
            compiler_params=pltpu.CompilerParams(
                dimension_semantics=("parallel", "arbitrary"),
                vmem_limit_bytes=vmem_limit,
            ),
            cost_estimate=cost,
        )(x2d, w1, b1_2d, w2, b2_2d)

    return out[:m].reshape(orig_shape)


def init_ffn_params(key, hidden_dim, pf_dim, dtype=jnp.float32):
    """nn.Linear-style init, weights pre-transposed to [in_dim, out_dim]."""
    k1, k2, k3, k4 = jax.random.split(key, 4)
    bound1 = 1.0 / jnp.sqrt(hidden_dim)
    bound2 = 1.0 / jnp.sqrt(pf_dim)
    w1 = jax.random.uniform(k1, (hidden_dim, pf_dim), dtype, -bound1, bound1)
    b1 = jax.random.uniform(k2, (pf_dim,), dtype, -bound1, bound1)
    w2 = jax.random.uniform(k3, (pf_dim, hidden_dim), dtype, -bound2, bound2)
    b2 = jax.random.uniform(k4, (hidden_dim,), dtype, -bound2, bound2)
    return w1, b1, w2, b2


if __name__ == "__main__":
    def _run(x, params, **kw):
        try:
            return jax.block_until_ready(positionwise_ffn(x, *params, **kw))
        except Exception:
            # Fallback if pipeline_mode=pl.Buffered(1) is unsupported on this build.
            return jax.block_until_ready(
                positionwise_ffn(x, *params, single_buffer_consts=False, **kw))

    key = jax.random.PRNGKey(0)

    # --- test 1: weights-resident path (small transformer-style shapes) ---------
    batch, seq, hidden_dim, pf_dim = 2, 8, 32, 64
    kx, kp, kx2, kp2 = jax.random.split(key, 4)
    x = jax.random.normal(kx, (batch, seq, hidden_dim), dtype=jnp.float32)
    params = init_ffn_params(kp, hidden_dim, pf_dim)
    out = _run(x, params)
    ref = jnp.maximum(x @ params[0] + params[1], 0.0) @ params[2] + params[3]
    assert out.shape == (batch, seq, hidden_dim)
    assert jnp.allclose(out, ref, atol=1e-5, rtol=1e-5), "resident path mismatch"

    # --- test 2: pf-tiled fallback path (forced, with accumulator scratch) -------
    hidden2, pf2 = 64, 256
    x2 = jax.random.normal(kx2, (batch, seq, hidden2), dtype=jnp.float32)
    params2 = init_ffn_params(kp2, hidden2, pf2)
    out2 = _run(x2, params2, block_p=128, force_tiled=True)
    ref2 = jnp.maximum(x2 @ params2[0] + params2[1], 0.0) @ params2[2] + params2[3]
    assert out2.shape == (batch, seq, hidden2)
    assert jnp.allclose(out2, ref2, atol=1e-5, rtol=1e-5), "tiled path mismatch"

    print("KERNEL_OK")
</pallas_src>

<mosaic_0001>
module attributes {stable_mosaic.version = 11 : i64} {
  func.func @_ffn_resident_kernel(%arg0: i32, %arg1: memref<8x32xf32, #tpu.memory_space<vmem>>, %arg2: memref<32x64xf32, #tpu.memory_space<vmem>>, %arg3: memref<1x64xf32, #tpu.memory_space<vmem>>, %arg4: memref<64x32xf32, #tpu.memory_space<vmem>>, %arg5: memref<1x32xf32, #tpu.memory_space<vmem>>, %arg6: memref<8x32xf32, #tpu.memory_space<vmem>>) attributes {dimension_semantics = [#tpu.dimension_semantics<parallel>], iteration_bounds = array<i64: 2>, scalar_prefetch = 0 : i64, scratch_operands = 0 : i64, tpu.core_type = #tpu.core_type<tc>, window_params = [{transform_indices = @transform_0, window_bounds = array<i64: 8, 32>}, {pipeline_mode = #tpu.pipeline_mode<synchronous>, transform_indices = @transform_1, window_bounds = array<i64: 32, 64>}, {pipeline_mode = #tpu.pipeline_mode<synchronous>, transform_indices = @transform_2, window_bounds = array<i64: 1, 64>}, {pipeline_mode = #tpu.pipeline_mode<synchronous>, transform_indices = @transform_3, window_bounds = array<i64: 64, 32>}, {pipeline_mode = #tpu.pipeline_mode<synchronous>, transform_indices = @transform_4, window_bounds = array<i64: 1, 32>}, {transform_indices = @transform_5, window_bounds = array<i64: 8, 32>}]} {
    %c0 = arith.constant 0 : index
    %c0_0 = arith.constant 0 : index
    %0 = vector.load %arg1[%c0, %c0_0] : memref<8x32xf32, #tpu.memory_space<vmem>>, vector<8x32xf32>
    %c0_1 = arith.constant 0 : index
    %c0_2 = arith.constant 0 : index
    %1 = vector.load %arg2[%c0_1, %c0_2] : memref<32x64xf32, #tpu.memory_space<vmem>>, vector<32x64xf32>
    %cst = arith.constant dense<0.000000e+00> : vector<8x64xf32>
    %2 = tpu.matmul %0, %1, %cst {dimension_numbers = #tpu.dot_dimension_numbers<[1], [0], [0], [1], [0, 0, 1, 1], [], []>} : vector<8x32xf32>, vector<32x64xf32>, vector<8x64xf32> -> vector<8x64xf32>
    %c0_3 = arith.constant 0 : index
    %c0_4 = arith.constant 0 : index
    %3 = vector.load %arg3[%c0_3, %c0_4] : memref<1x64xf32, #tpu.memory_space<vmem>>, vector<1x64xf32>
    %4 = vector.broadcast %3 : vector<1x64xf32> to vector<8x64xf32>
    %5 = arith.addf %2, %4 : vector<8x64xf32>
    %cst_5 = arith.constant 0.000000e+00 : f32
    %6 = vector.broadcast %cst_5 : f32 to vector<8x64xf32>
    %7 = arith.maximumf %5, %6 : vector<8x64xf32>
    %c0_6 = arith.constant 0 : index
    %c0_7 = arith.constant 0 : index
    %8 = vector.load %arg4[%c0_6, %c0_7] : memref<64x32xf32, #tpu.memory_space<vmem>>, vector<64x32xf32>
    %cst_8 = arith.constant dense<0.000000e+00> : vector<8x32xf32>
    %9 = tpu.matmul %7, %8, %cst_8 {dimension_numbers = #tpu.dot_dimension_numbers<[1], [0], [0], [1], [0, 0, 1, 1], [], []>} : vector<8x64xf32>, vector<64x32xf32>, vector<8x32xf32> -> vector<8x32xf32>
    %c0_9 = arith.constant 0 : index
    %c0_10 = arith.constant 0 : index
    %10 = vector.load %arg5[%c0_9, %c0_10] : memref<1x32xf32, #tpu.memory_space<vmem>>, vector<1x32xf32>
    %11 = vector.broadcast %10 : vector<1x32xf32> to vector<8x32xf32>
    %12 = arith.addf %9, %11 : vector<8x32xf32>
    %c0_11 = arith.constant 0 : index
    %c0_12 = arith.constant 0 : index
    %13 = vector.load %arg6[%c0_11, %c0_12] : memref<8x32xf32, #tpu.memory_space<vmem>>, vector<8x32xf32>
    tpu.vector_store %arg6[%c0_11, %c0_12], %12 {strides = array<i32>} : memref<8x32xf32, #tpu.memory_space<vmem>>, vector<8x32xf32>,
    return
  }
  func.func @transform_0(%arg0: i32) -> (i32, i32) {
    %c0_i32 = arith.constant 0 : i32
    %c0_i32_0 = arith.constant 0 : i32
    return %arg0, %c0_i32 : i32, i32
  }
  func.func @transform_1(%arg0: i32) -> (i32, i32) {
    %c0_i32 = arith.constant 0 : i32
    %c0_i32_0 = arith.constant 0 : i32
    %c0_i32_1 = arith.constant 0 : i32
    return %c0_i32, %c0_i32_0 : i32, i32
  }
  func.func @transform_2(%arg0: i32) -> (i32, i32) {
    %c0_i32 = arith.constant 0 : i32
    %c0_i32_0 = arith.constant 0 : i32
    %c0_i32_1 = arith.constant 0 : i32
    return %c0_i32, %c0_i32_0 : i32, i32
  }
  func.func @transform_3(%arg0: i32) -> (i32, i32) {
    %c0_i32 = arith.constant 0 : i32
    %c0_i32_0 = arith.constant 0 : i32
    %c0_i32_1 = arith.constant 0 : i32
    return %c0_i32, %c0_i32_0 : i32, i32
  }
  func.func @transform_4(%arg0: i32) -> (i32, i32) {
    %c0_i32 = arith.constant 0 : i32
    %c0_i32_0 = arith.constant 0 : i32
    %c0_i32_1 = arith.constant 0 : i32
    return %c0_i32, %c0_i32_0 : i32, i32
  }
  func.func @transform_5(%arg0: i32) -> (i32, i32) {
    %c0_i32 = arith.constant 0 : i32
    %c0_i32_0 = arith.constant 0 : i32
    return %arg0, %c0_i32 : i32, i32
  }
}

module attributes {stable_mosaic.version = 11 : i64} {
  func.func @_ffn_resident_kernel(%arg0: i32, %arg1: memref<8x32xf32, #tpu.memory_space<vmem>>, %arg2: memref<32x64xf32, #tpu.memory_space<vmem>>, %arg3: memref<1x64xf32, #tpu.memory_space<vmem>>, %arg4: memref<64x32xf32, #tpu.memory_space<vmem>>, %arg5: memref<1x32xf32, #tpu.memory_space<vmem>>, %arg6: memref<8x32xf32, #tpu.memory_space<vmem>>) attributes {dimension_semantics = [#tpu.dimension_semantics<parallel>], iteration_bounds = array<i64: 2>, scalar_prefetch = 0 : i64, scratch_operands = 0 : i64, tpu.core_type = #tpu.core_type<tc>, window_params = [{transform_indices = @transform_0, window_bounds = array<i64: 8, 32>}, {pipeline_mode = #tpu.pipeline_mode<synchronous>, transform_indices = @transform_1, window_bounds = array<i64: 32, 64>}, {pipeline_mode = #tpu.pipeline_mode<synchronous>, transform_indices = @transform_2, window_bounds = array<i64: 1, 64>}, {pipeline_mode = #tpu.pipeline_mode<synchronous>, transform_indices = @transform_3, window_bounds = array<i64: 64, 32>}, {pipeline_mode = #tpu.pipeline_mode<synchronous>, transform_indices = @transform_4, window_bounds = array<i64: 1, 32>}, {transform_indices = @transform_5, window_bounds = array<i64: 8, 32>}]} {
    %c0 = arith.constant 0 : index
    %c0_0 = arith.constant 0 : index
    %0 = vector.load %arg1[%c0, %c0_0] : memref<8x32xf32, #tpu.memory_space<vmem>>, vector<8x32xf32>
    %c0_1 = arith.constant 0 : index
    %c0_2 = arith.constant 0 : index
    %1 = vector.load %arg2[%c0_1, %c0_2] : memref<32x64xf32, #tpu.memory_space<vmem>>, vector<32x64xf32>
    %cst = arith.constant dense<0.000000e+00> : vector<8x64xf32>
    %2 = tpu.matmul %0, %1, %cst {dimension_numbers = #tpu.dot_dimension_numbers<[1], [0], [0], [1], [0, 0, 1, 1], [], []>} : vector<8x32xf32>, vector<32x64xf32>, vector<8x64xf32> -> vector<8x64xf32>
    %c0_3 = arith.constant 0 : index
    %c0_4 = arith.constant 0 : index
    %3 = vector.load %arg3[%c0_3, %c0_4] : memref<1x64xf32, #tpu.memory_space<vmem>>, vector<1x64xf32>
    %4 = vector.broadcast %3 : vector<1x64xf32> to vector<8x64xf32>
    %5 = arith.addf %2, %4 : vector<8x64xf32>
    %cst_5 = arith.constant 0.000000e+00 : f32
    %6 = vector.broadcast %cst_5 : f32 to vector<8x64xf32>
    %7 = arith.maximumf %5, %6 : vector<8x64xf32>
    %c0_6 = arith.constant 0 : index
    %c0_7 = arith.constant 0 : index
    %8 = vector.load %arg4[%c0_6, %c0_7] : memref<64x32xf32, #tpu.memory_space<vmem>>, vector<64x32xf32>
    %cst_8 = arith.constant dense<0.000000e+00> : vector<8x32xf32>
    %9 = tpu.matmul %7, %8, %cst_8 {dimension_numbers = #tpu.dot_dimension_numbers<[1], [0], [0], [1], [0, 0, 1, 1], [], []>} : vector<8x64xf32>, vector<64x32xf32>, vector<8x32xf32> -> vector<8x32xf32>
    %c0_9 = arith.constant 0 : index
    %c0_10 = arith.constant 0 : index
    %10 = vector.load %arg5[%c0_9, %c0_10] : memref<1x32xf32, #tpu.memory_space<vmem>>, vector<1x32xf32>
    %11 = vector.broadcast %10 : vector<1x32xf32> to vector<8x32xf32>
    %12 = arith.addf %9, %11 : vector<8x32xf32>
    %c0_11 = arith.constant 0 : index
    %c0_12 = arith.constant 0 : index
    %13 = vector.load %arg6[%c0_11, %c0_12] : memref<8x32xf32, #tpu.memory_space<vmem>>, vector<8x32xf32>
    tpu.vector_store %arg6[%c0_11, %c0_12], %12 {strides = array<i32>} : memref<8x32xf32, #tpu.memory_space<vmem>>, vector<8x32xf32>,
    return
  }
  func.func @transform_0(%arg0: i32) -> (i32, i32) {
    %c0_i32 = arith.constant 0 : i32
    %c0_i32_0 = arith.constant 0 : i32
    return %arg0, %c0_i32 : i32, i32
  }
  func.func @transform_1(%arg0: i32) -> (i32, i32) {
    %c0_i32 = arith.constant 0 : i32
    %c0_i32_0 = arith.constant 0 : i32
    %c0_i32_1 = arith.constant 0 : i32
    return %c0_i32, %c0_i32_0 : i32, i32
  }
  func.func @transform_2(%arg0: i32) -> (i32, i32) {
    %c0_i32 = arith.constant 0 : i32
    %c0_i32_0 = arith.constant 0 : i32
    %c0_i32_1 = arith.constant 0 : i32
    return %c0_i32, %c0_i32_0 : i32, i32
  }
  func.func @transform_3(%arg0: i32) -> (i32, i32) {
    %c0_i32 = arith.constant 0 : i32
    %c0_i32_0 = arith.constant 0 : i32
    %c0_i32_1 = arith.constant 0 : i32
    return %c0_i32, %c0_i32_0 : i32, i32
  }
  func.func @transform_4(%arg0: i32) -> (i32, i32) {
    %c0_i32 = arith.constant 0 : i32
    %c0_i32_0 = arith.constant 0 : i32
    %c0_i32_1 = arith.constant 0 : i32
    return %c0_i32, %c0_i32_0 : i32, i32
  }
  func.func @transform_5(%arg0: i32) -> (i32, i32) {
    %c0_i32 = arith.constant 0 : i32
    %c0_i32_0 = arith.constant 0 : i32
    return %arg0, %c0_i32 : i32, i32
  }
}

</mosaic_0001>

<bundles_post_ra>
// kernel: positionwise_ffn.1
= control target key start
LH: loop header
LB: loop body
LE: loop exit
PB: predicated region body
PF: predicated region fallthrough
CT: control target
= control target key end

     0   :  { %10 = vsyncpa [#allocation3], 0  ;;  %s642_s0 = inlined_call_operand.vmem [shape: f32[16,32], index: 0, kind: input, shape index: {}]   ;;  %s643_s1 = inlined_call_operand.vmem [shape: f32[32,64], index: 1, kind: input, shape index: {}]   ;;  %s644_s2 = inlined_call_operand.vmem [shape: f32[1,64], index: 2, kind: input, shape index: {}]   ;;  %s645_s3 = inlined_call_operand.vmem [shape: f32[64,32], index: 3, kind: input, shape index: {}]   ;;  %s646_s4 = inlined_call_operand.vmem [shape: f32[1,32], index: 4, kind: input, shape index: {}]   ;;  %s647_s5 = inlined_call_operand.hbm [shape: f32[16,32], index: 5, kind: output, shape index: {}]  }
   0x1   :  { %12 = vsyncpa [#allocation3 + $0x1], 0  ;;  %s513_s18 = smov 0   ;;  %s515_s19 = smov 0  }
   0x2   :  { %s517_s20 = smov 0   ;;  %s519_s21 = smov 0  }
   0x3 LB: > { %s534_s22 = sadd.s32 4294967295, %s481_s21   ;;  %s366_s23 = sadd.s32 4294967294, %s481_s21   ;;  %s481_s21 = sphi %s519_s21, %s653_s21   ;;  %s477_s20 = sphi %s517_s20, %s652_s20   ;;  %s473_s19 = sphi %s515_s19, %s651_s19   ;;  %s469_s18 = sphi %s513_s18, %s650_s18  }
   0x4   : > { %s538_s24 = sadd.s32 1, %s481_s21   ;;  %s135_s25 = sadd.s32 1, %s477_s20 }
   0x5   : > { %s132_s26 = ssub.s32 %s481_s21, %s538_s24  ;;  %p145_p0 = scmp.ne.s32.totalorder %s477_s20, %s473_s19 }
   0x6   : > { %p133_p1 = scmp.eq.s32.totalorder %s132_s26, 0  ;;  %p146_p2 = scmp.eq.s32.totalorder %s534_s22, 1 }
   0x7   : > { %p151_p3 = scmp.ne.s32.totalorder %s473_s19, %s469_s18  ;;  %p152_p4 = scmp.eq.s32.totalorder %s366_s23, 1 }
   0x8   : > { %s549_s27 = scalar_select %p133_p1, %s477_s20, %s135_s25  }
   0x9   : > { %p551_p5 = por %p146_p2, %p145_p0  ;;  %p555_p6 = por %p152_p4, %p151_p3 }
   0xa   : > { %p369_p7 = scmp.ge.s32.totalorder %s481_s21, 1  ;;  %p189_p8 = scmp.lt.s32.totalorder %s481_s21, 3 }
   0xc   : > { %p190_p9 = pnand %p369_p7, %p189_p8 }
   0xd   : > { %p216_p10 = scmp.lt.s32.totalorder (!%p190_p9), %s534_s22, 1  ;;  %s375_s6 = sshll.u32 (!%p190_p9), %s534_s22, 3 }
   0xe   : > { %193 = sbr.rel (%p190_p9) target bundleno = 288 (0x120), region = 40  ;;  %s302_s9 = scalar_lea.hbm (!%p190_p9), %s647_s5, %s375_s6 }
   0xf   : > { %s306_s14 = sshll.u32 (!%p190_p9), %s302_s9, 4  ;;  %s439_s25 = scalar_lea.hbm (!%p190_p9), %s647_s5, 16  ;;  %s307_s14 = int_to_ptr.hbm [resolvable:$true] %s306_s14 }
  0x13   : > { %v224_v0 = vld [vmem:[%s643_s1 + $0x18] sm:$0xff]  ;;  %v223_v1 = vld [vmem:[%s643_s1 + $0x10] sm:$0xff]  ;;  %v222_v4 = vld [vmem:[%s643_s1 + $0x8] sm:$0xff]  ;;  %s217_s15 = scalar_select %p216_p10, %s534_s22, 1  ;;  %vm229_vm0 = vcmask 261120   ;;  %vm266_vm1 = vcmask 523264  }
  0x14   : > { %245 = vmatpush.msra.mxu0 %v224_v0  ;;  %v261_v2 = vld [vmem:[%s645_s3 + $0x38] sm:$0xff]  ;;  %v260_v3 = vld [vmem:[%s645_s3 + $0x30] sm:$0xff]  ;;  %v259_v5 = vld [vmem:[%s645_s3 + $0x28] sm:$0xff]  ;;  %s433_s22 = sshra.s32 %s307_s14, 4  ;;  %s434_s22 = int_to_ptr.hbm [resolvable:$true] %s433_s22 }
  0x15   : > { %278 = vmatpush.msra.mxu1 %v261_v2  ;;  %v221_v6 = vld [vmem:[%s643_s1] sm:$0xff]  ;;  %s371_s26 = sshll.u32 %s217_s15, 3  ;;  %v257_v9 = vld [vmem:[%s645_s3 + $0x18] sm:$0xff]  ;;  %v256_v10 = vld [vmem:[%s645_s3 + $0x10] sm:$0xff]  ;;  %s435_s16 = scalar_lea.hbm %s434_s22, 8 }
  0x16   : > { %246 = vmatpush.msra.mxu0 %v223_v1  ;;  %s219_s7 = scalar_lea.vmem %s642_s0, %s371_s26  ;;  %v258_v7 = vld [vmem:[%s645_s3 + $0x20] sm:$0xff]  ;;  %v255_v11 = vld [vmem:[%s645_s3 + $0x8] sm:$0xff]  ;;  %s213_s26 = sand.u32 1, %s473_s19  }
  0x17   : > { %279 = vmatpush.msra.mxu1 %v260_v3  ;;  %v220_v8 = vld [vmem:[%s219_s7] sm:$0xff]  ;;  %s370_s30 = sshll.u32 %s213_s26, 3  ;;  %s292_s15 = scalar_lea.sflag [#allocation3], %s213_s26 }
  0x18   : > { %247 = vmatpush.msra.mxu0 %v222_v4  ;;  %v254_v12 = vld [vmem:[%s645_s3] sm:$0xff]  ;;  %s215_s12 = scalar_lea.vmem [#allocation2], %s370_s30  ;;  %p436_p11 = scmp.ne.s32.totalorder %s434_s22, %s435_s16 }
  0x19   : > { %280 = vmatpush.msra.mxu1 %v259_v5  ;;  %v417_v13 = vld [vmem:[%s644_s2] ss:$0 sm:$0xff]  ;;  %s304_s13 = sshll.u32 %s215_s12, 4  ;;  %p440_p0 = scmp.lt.s32.totalorder %s434_s22, %s647_s5  ;;  %s305_s13 = int_to_ptr.vmem [resolvable:$true] %s304_s13 }
  0x1a   : > { %248 = vmatpush.msra.mxu0 %v221_v6  ;;  %v418_v17 = vld [vmem:[%s646_s4] ss:$0 sm:$0xff]  ;;  %p437_p12 = pnand %p436_p11, %p551_p5  ;;  %p441_p1 = scmp.lt.s32.totalorder %s439_s25, %s435_s16 }
  0x1b   : > { %372 = vmatmul.msk.f32.vlgmr.msra.gmra.mxu0 %vm229_vm0, %v220_v8  ;;  %281 = vmatpush.msra.mxu1 %v258_v7 }
  0x1c   : > { %p438_p13 = pneg %p437_p12  ;;  %p442_p2 = por %p441_p1, %p440_p0 }
  0x1d   : > { %282 = vmatpush.msra.mxu1 %v257_v9 }
  0x1e   : > { %p443_p3 = pnand %p442_p2, %p438_p13 }
  0x1f   : > { %283 = vmatpush.msra.mxu1 %v256_v10 }
  0x21   : > { %284 = vmatpush.msra.mxu1 %v255_v11 }
  0x23   : > { %285 = vmatpush.msra.mxu1 %v254_v12 }
  0x98   : > { %v250_v14 = vpop.f32.mrf.mxu0 }
  0x99   : > { %v251_v15 = vadd.f32 %v417_v13, %v250_v14 }
  0x9b   : > { %v253_v16 = vmax.f32 %v251_v15, 0.0 }
  0x9d   : > { %373 = vmatmul.msk.f32.vlgmr.msra.gmra.mxu1 %vm266_vm1, %v253_v16 }
 0x11a   : > { %v287_v18 = vpop.f32.mrf.mxu1 }
 0x11b   : > { %v288_v19 = vadd.f32 %v418_v17, %v287_v18 }
 0x11d   : > { %290 = vst.msk [vmem:[%s215_s12] sm:$0xff] %vm229_vm0, %v288_v19 }
 0x11e   : > { %446 = shalt.err (!%p443_p3)
}
 0x11f   : > { %378 = dma.vmem_to_hbm [thread:$0]  (%p551_p5), %s305_s13, 128, %s307_s14, %s292_s15  }
 0x120 PF: > { %p384_p4 = scmp.ge.s32.totalorder %s481_s21, 2  ;;  %s318_s26 = sand.u32 1, %s469_s18  }
 0x121   : > { %s319_s7 = scalar_lea.sflag [#allocation3], %s318_s26 }
 0x122   : > { %p381_p7 = pnand %p384_p4, %p555_p6 }
 0x124   : > { %p382_p8 = pneg %p381_p7 }
 0x126   : > { %464 = dma.done.wait (%p382_p8), %s319_s7, 128  }
 0x127   : > { %466 = vsyncadd (%p382_p8), %s319_s7, 4294967168  ;;  %p15_p9 = scmp.ge.s32.totalorder %s538_s24, 4   ;;  %s650_s18 = smov %s473_s19 }
 0x128   : > { %s651_s19 = smov %s477_s20  ;;  %s652_s20 = smov %s549_s27 }
 0x129   : > { %s653_s21 = smov %s538_s24  ;;  %17 = sbr.rel (!%p15_p9) target bundleno = 3 (0x3), region = 75 }
 0x12e   :  { %325 = vsyncpa [#allocation3], 1 }
 0x12f   :  { %327 = vsyncpa [#allocation3 + $0x1], 1 }

// kernel: positionwise_ffn.1
= control target key start
LH: loop header
LB: loop body
LE: loop exit
PB: predicated region body
PF: predicated region fallthrough
CT: control target
= control target key end

     0   :  { %10 = vsyncpa [#allocation3], 0  ;;  %s642_s0 = inlined_call_operand.vmem [shape: f32[16,32], index: 0, kind: input, shape index: {}]   ;;  %s643_s1 = inlined_call_operand.vmem [shape: f32[32,64], index: 1, kind: input, shape index: {}]   ;;  %s644_s2 = inlined_call_operand.vmem [shape: f32[1,64], index: 2, kind: input, shape index: {}]   ;;  %s645_s3 = inlined_call_operand.vmem [shape: f32[64,32], index: 3, kind: input, shape index: {}]   ;;  %s646_s4 = inlined_call_operand.vmem [shape: f32[1,32], index: 4, kind: input, shape index: {}]   ;;  %s647_s5 = inlined_call_operand.hbm [shape: f32[16,32], index: 5, kind: output, shape index: {}]  }
   0x1   :  { %12 = vsyncpa [#allocation3 + $0x1], 0  ;;  %s513_s18 = smov 0   ;;  %s515_s19 = smov 0  }
   0x2   :  { %s517_s20 = smov 0   ;;  %s519_s21 = smov 0  }
   0x3 LB: > { %s534_s22 = sadd.s32 4294967295, %s481_s21   ;;  %s366_s23 = sadd.s32 4294967294, %s481_s21   ;;  %s481_s21 = sphi %s519_s21, %s653_s21   ;;  %s477_s20 = sphi %s517_s20, %s652_s20   ;;  %s473_s19 = sphi %s515_s19, %s651_s19   ;;  %s469_s18 = sphi %s513_s18, %s650_s18  }
   0x4   : > { %s538_s24 = sadd.s32 1, %s481_s21   ;;  %s135_s25 = sadd.s32 1, %s477_s20 }
   0x5   : > { %s132_s26 = ssub.s32 %s481_s21, %s538_s24  ;;  %p145_p0 = scmp.ne.s32.totalorder %s477_s20, %s473_s19 }
   0x6   : > { %p133_p1 = scmp.eq.s32.totalorder %s132_s26, 0  ;;  %p146_p2 = scmp.eq.s32.totalorder %s534_s22, 1 }
   0x7   : > { %p151_p3 = scmp.ne.s32.totalorder %s473_s19, %s469_s18  ;;  %p152_p4 = scmp.eq.s32.totalorder %s366_s23, 1 }
   0x8   : > { %s549_s27 = scalar_select %p133_p1, %s477_s20, %s135_s25  }
   0x9   : > { %p551_p5 = por %p146_p2, %p145_p0  ;;  %p555_p6 = por %p152_p4, %p151_p3 }
   0xa   : > { %p369_p7 = scmp.ge.s32.totalorder %s481_s21, 1  ;;  %p189_p8 = scmp.lt.s32.totalorder %s481_s21, 3 }
   0xc   : > { %p190_p9 = pnand %p369_p7, %p189_p8 }
   0xd   : > { %p216_p10 = scmp.lt.s32.totalorder (!%p190_p9), %s534_s22, 1  ;;  %s375_s6 = sshll.u32 (!%p190_p9), %s534_s22, 3 }
   0xe   : > { %193 = sbr.rel (%p190_p9) target bundleno = 288 (0x120), region = 40  ;;  %s302_s9 = scalar_lea.hbm (!%p190_p9), %s647_s5, %s375_s6 }
   0xf   : > { %s306_s14 = sshll.u32 (!%p190_p9), %s302_s9, 4  ;;  %s439_s25 = scalar_lea.hbm (!%p190_p9), %s647_s5, 16  ;;  %s307_s14 = int_to_ptr.hbm [resolvable:$true] %s306_s14 }
  0x13   : > { %v224_v0 = vld [vmem:[%s643_s1 + $0x18] sm:$0xff]  ;;  %v223_v1 = vld [vmem:[%s643_s1 + $0x10] sm:$0xff]  ;;  %v222_v4 = vld [vmem:[%s643_s1 + $0x8] sm:$0xff]  ;;  %s217_s15 = scalar_select %p216_p10, %s534_s22, 1  ;;  %vm229_vm0 = vcmask 261120   ;;  %vm266_vm1 = vcmask 523264  }
  0x14   : > { %245 = vmatpush.msra.mxu0 %v224_v0  ;;  %v261_v2 = vld [vmem:[%s645_s3 + $0x38] sm:$0xff]  ;;  %v260_v3 = vld [vmem:[%s645_s3 + $0x30] sm:$0xff]  ;;  %v259_v5 = vld [vmem:[%s645_s3 + $0x28] sm:$0xff]  ;;  %s433_s22 = sshra.s32 %s307_s14, 4  ;;  %s434_s22 = int_to_ptr.hbm [resolvable:$true] %s433_s22 }
  0x15   : > { %278 = vmatpush.msra.mxu1 %v261_v2  ;;  %v221_v6 = vld [vmem:[%s643_s1] sm:$0xff]  ;;  %s371_s26 = sshll.u32 %s217_s15, 3  ;;  %v257_v9 = vld [vmem:[%s645_s3 + $0x18] sm:$0xff]  ;;  %v256_v10 = vld [vmem:[%s645_s3 + $0x10] sm:$0xff]  ;;  %s435_s16 = scalar_lea.hbm %s434_s22, 8 }
  0x16   : > { %246 = vmatpush.msra.mxu0 %v223_v1  ;;  %s219_s7 = scalar_lea.vmem %s642_s0, %s371_s26  ;;  %v258_v7 = vld [vmem:[%s645_s3 + $0x20] sm:$0xff]  ;;  %v255_v11 = vld [vmem:[%s645_s3 + $0x8] sm:$0xff]  ;;  %s213_s26 = sand.u32 1, %s473_s19  }
  0x17   : > { %279 = vmatpush.msra.mxu1 %v260_v3  ;;  %v220_v8 = vld [vmem:[%s219_s7] sm:$0xff]  ;;  %s370_s30 = sshll.u32 %s213_s26, 3  ;;  %s292_s15 = scalar_lea.sflag [#allocation3], %s213_s26 }
  0x18   : > { %247 = vmatpush.msra.mxu0 %v222_v4  ;;  %v254_v12 = vld [vmem:[%s645_s3] sm:$0xff]  ;;  %s215_s12 = scalar_lea.vmem [#allocation2], %s370_s30  ;;  %p436_p11 = scmp.ne.s32.totalorder %s434_s22, %s435_s16 }
  0x19   : > { %280 = vmatpush.msra.mxu1 %v259_v5  ;;  %v417_v13 = vld [vmem:[%s644_s2] ss:$0 sm:$0xff]  ;;  %s304_s13 = sshll.u32 %s215_s12, 4  ;;  %p440_p0 = scmp.lt.s32.totalorder %s434_s22, %s647_s5  ;;  %s305_s13 = int_to_ptr.vmem [resolvable:$true] %s304_s13 }
  0x1a   : > { %248 = vmatpush.msra.mxu0 %v221_v6  ;;  %v418_v17 = vld [vmem:[%s646_s4] ss:$0 sm:$0xff]  ;;  %p437_p12 = pnand %p436_p11, %p551_p5  ;;  %p441_p1 = scmp.lt.s32.totalorder %s439_s25, %s435_s16 }
  0x1b   : > { %372 = vmatmul.msk.f32.vlgmr.msra.gmra.mxu0 %vm229_vm0, %v220_v8  ;;  %281 = vmatpush.msra.mxu1 %v258_v7 }
  0x1c   : > { %p438_p13 = pneg %p437_p12  ;;  %p442_p2 = por %p441_p1, %p440_p0 }
  0x1d   : > { %282 = vmatpush.msra.mxu1 %v257_v9 }
  0x1e   : > { %p443_p3 = pnand %p442_p2, %p438_p13 }
  0x1f   : > { %283 = vmatpush.msra.mxu1 %v256_v10 }
  0x21   : > { %284 = vmatpush.msra.mxu1 %v255_v11 }
  0x23   : > { %285 = vmatpush.msra.mxu1 %v254_v12 }
  0x98   : > { %v250_v14 = vpop.f32.mrf.mxu0 }
  0x99   : > { %v251_v15 = vadd.f32 %v417_v13, %v250_v14 }
  0x9b   : > { %v253_v16 = vmax.f32 %v251_v15, 0.0 }
  0x9d   : > { %373 = vmatmul.msk.f32.vlgmr.msra.gmra.mxu1 %vm266_vm1, %v253_v16 }
 0x11a   : > { %v287_v18 = vpop.f32.mrf.mxu1 }
 0x11b   : > { %v288_v19 = vadd.f32 %v418_v17, %v287_v18 }
 0x11d   : > { %290 = vst.msk [vmem:[%s215_s12] sm:$0xff] %vm229_vm0, %v288_v19 }
 0x11e   : > { %446 = shalt.err (!%p443_p3)
}
 0x11f   : > { %378 = dma.vmem_to_hbm [thread:$0]  (%p551_p5), %s305_s13, 128, %s307_s14, %s292_s15  }
 0x120 PF: > { %p384_p4 = scmp.ge.s32.totalorder %s481_s21, 2  ;;  %s318_s26 = sand.u32 1, %s469_s18  }
 0x121   : > { %s319_s7 = scalar_lea.sflag [#allocation3], %s318_s26 }
 0x122   : > { %p381_p7 = pnand %p384_p4, %p555_p6 }
 0x124   : > { %p382_p8 = pneg %p381_p7 }
 0x126   : > { %464 = dma.done.wait (%p382_p8), %s319_s7, 128  }
 0x127   : > { %466 = vsyncadd (%p382_p8), %s319_s7, 4294967168  ;;  %p15_p9 = scmp.ge.s32.totalorder %s538_s24, 4   ;;  %s650_s18 = smov %s473_s19 }
 0x128   : > { %s651_s19 = smov %s477_s20  ;;  %s652_s20 = smov %s549_s27 }
 0x129   : > { %s653_s21 = smov %s538_s24  ;;  %17 = sbr.rel (!%p15_p9) target bundleno = 3 (0x3), region = 75 }
 0x12e   :  { %325 = vsyncpa [#allocation3], 1 }
 0x12f   :  { %327 = vsyncpa [#allocation3 + $0x1], 1 }

</bundles_post_ra>
